<compile_context>
chip_gen: v7x
topology: tpu7x:2x2x1
jax: 0.10.0
libtpu: 0.0.40
codegen_flags: <defaults>
</compile_context>

<pallas_src>
import jax
import jax.numpy as jnp
from jax.experimental import pallas as pl
from jax.experimental.pallas import tpu as pltpu


def _mlp_logsoftmax_kernel(x_ref, w1_ref, b1_ref, w2_ref, b2_ref,
                           w3_ref, b3_ref, o_ref):
    # Single explicit cast to bf16 for the MXU; accumulate in f32.
    x = x_ref[...].astype(jnp.bfloat16)

    # layer1 + layer2 (Linear 20->400, ReLU)
    h1 = jnp.dot(x, w1_ref[...], preferred_element_type=jnp.float32) + b1_ref[...]
    h1 = jnp.maximum(h1, 0.0).astype(jnp.bfloat16)

    # layer3 + layer4 (Linear 400->400, ReLU)
    h2 = jnp.dot(h1, w2_ref[...], preferred_element_type=jnp.float32) + b2_ref[...]
    h2 = jnp.maximum(h2, 0.0).astype(jnp.bfloat16)

    # layer5 (Linear 400->2, logits)
    z = jnp.dot(h2, w3_ref[...], preferred_element_type=jnp.float32) + b3_ref[...]

    # layer6: analytic 2-class LogSoftmax (no cross-lane reduce).
    #   logsumexp(z0, z1) = max(z0, z1) + log1p(exp(-|z0 - z1|))
    z0 = z[:, 0:1]
    z1 = z[:, 1:2]
    m = jnp.maximum(z0, z1)
    lse = m + jnp.log1p(jnp.exp(-jnp.abs(z0 - z1)))
    o_ref[...] = z - lse


def _round_up(n, m):
    return ((n + m - 1) // m) * m


def dnn_action_detect_forward(x, params, *, tile_b=512):
    """x: (B, 20) float32; params: bf16 weights (in,out) / f32 biases (1,out).

    Returns (B, 2) float32 log-probabilities.
    """
    w1, b1 = params["w1"], params["b1"]
    w2, b2 = params["w2"], params["b2"]
    w3, b3 = params["w3"], params["b3"]
    B = x.shape[0]

    # Batch tile: multiple of 8 sublanes, capped at `tile_b` for large batches.
    tb = min(tile_b, _round_up(B, 8))
    Bp = _round_up(B, tb)
    if Bp != B:
        x = jnp.pad(x, ((0, Bp - B), (0, 0)))
    grid = (Bp // tb,)

    flops = 2 * Bp * (20 * 400 + 400 * 400 + 400 * 2)
    bytes_accessed = (
        (w1.size + w2.size + w3.size) * 2          # bf16 weights
        + (b1.size + b2.size + b3.size) * 4        # f32 biases
        + Bp * 20 * 4                              # input
        + Bp * 2 * 4                               # output
    )
    cost = pl.CostEstimate(flops=flops,
                           transcendentals=Bp * 2,
                           bytes_accessed=bytes_accessed)

    # Constant index_map => block is identical across grid steps, so Mosaic's
    # pipeliner keeps the weight/bias tiles resident in VMEM (no re-DMA).
    resident = lambda shape: pl.BlockSpec(shape, lambda i: (0, 0))

    out = pl.pallas_call(
        _mlp_logsoftmax_kernel,
        out_shape=jax.ShapeDtypeStruct((Bp, 2), jnp.float32),
        grid=grid,
        in_specs=[
            pl.BlockSpec((tb, 20), lambda i: (i, 0)),   # x tile per grid step
            resident(w1.shape), resident(b1.shape),
            resident(w2.shape), resident(b2.shape),
            resident(w3.shape), resident(b3.shape),
        ],
        out_specs=pl.BlockSpec((tb, 2), lambda i: (i, 0)),
        compiler_params=pltpu.CompilerParams(
            dimension_semantics=("parallel",),
            vmem_limit_bytes=8 << 20,
        ),
        cost_estimate=cost,
    )(x, w1, b1, w2, b2, w3, b3)

    return out[:B]


def init_params(key):
    """Deterministic init mimicking torch.nn.Linear default (U[-1/sqrt(fan_in), +]).

    Weights are stored transposed to (in, out) and cast to bf16; biases are f32
    with shape (1, out) so they broadcast over the batch tile inside the kernel.
    """
    def linear(key, fan_in, fan_out):
        kw, kb = jax.random.split(key)
        bound = 1.0 / jnp.sqrt(fan_in)
        w = jax.random.uniform(kw, (fan_in, fan_out), jnp.float32, -bound, bound)
        b = jax.random.uniform(kb, (1, fan_out), jnp.float32, -bound, bound)
        return w.astype(jnp.bfloat16), b

    k1, k2, k3 = jax.random.split(key, 3)
    w1, b1 = linear(k1, 20, 400)
    w2, b2 = linear(k2, 400, 400)
    w3, b3 = linear(k3, 400, 2)
    return {"w1": w1, "b1": b1, "w2": w2, "b2": b2, "w3": w3, "b3": b3}


def _reference(x, p):
    """Pure-JAX reference following the same bf16-input / f32-accumulate path."""
    h1 = jnp.dot(x.astype(jnp.bfloat16), p["w1"],
                 preferred_element_type=jnp.float32) + p["b1"]
    h1 = jnp.maximum(h1, 0.0).astype(jnp.bfloat16)
    h2 = jnp.dot(h1, p["w2"], preferred_element_type=jnp.float32) + p["b2"]
    h2 = jnp.maximum(h2, 0.0).astype(jnp.bfloat16)
    z = jnp.dot(h2, p["w3"], preferred_element_type=jnp.float32) + p["b3"]
    return jax.nn.log_softmax(z, axis=1)


if __name__ == "__main__":
    key = jax.random.PRNGKey(0)
    kx, kp = jax.random.split(key)

    B = 8  # small batch
    x = jax.random.normal(kx, (B, 20), jnp.float32)
    params = init_params(kp)

    out = dnn_action_detect_forward(x, params)
    out = jax.block_until_ready(out)

    ref = _reference(x, params)
    assert out.shape == (B, 2), out.shape
    assert jnp.allclose(out, ref, atol=1e-4, rtol=1e-4), (
        f"max abs diff {jnp.max(jnp.abs(out - ref))}")

    print("KERNEL_OK")
</pallas_src>

<mosaic_0001>
module attributes {stable_mosaic.version = 11 : i64} {
  func.func @_mlp_logsoftmax_kernel(%arg0: i32, %arg1: memref<8x20xf32, #tpu.memory_space<vmem>>, %arg2: memref<20x400xbf16, #tpu.memory_space<vmem>>, %arg3: memref<1x400xf32, #tpu.memory_space<vmem>>, %arg4: memref<400x400xbf16, #tpu.memory_space<vmem>>, %arg5: memref<1x400xf32, #tpu.memory_space<vmem>>, %arg6: memref<400x2xbf16, #tpu.memory_space<vmem>>, %arg7: memref<1x2xf32, #tpu.memory_space<vmem>>, %arg8: memref<8x2xf32, #tpu.memory_space<vmem>>) attributes {dimension_semantics = [#tpu.dimension_semantics<parallel>], iteration_bounds = array<i64: 1>, scalar_prefetch = 0 : i64, scratch_operands = 0 : i64, tpu.core_type = #tpu.core_type<tc>, window_params = [{transform_indices = @transform_0, window_bounds = array<i64: 8, 20>}, {pipeline_mode = #tpu.pipeline_mode<synchronous>, transform_indices = @transform_1, window_bounds = array<i64: 20, 400>}, {pipeline_mode = #tpu.pipeline_mode<synchronous>, transform_indices = @transform_2, window_bounds = array<i64: 1, 400>}, {pipeline_mode = #tpu.pipeline_mode<synchronous>, transform_indices = @transform_3, window_bounds = array<i64: 400, 400>}, {pipeline_mode = #tpu.pipeline_mode<synchronous>, transform_indices = @transform_4, window_bounds = array<i64: 1, 400>}, {pipeline_mode = #tpu.pipeline_mode<synchronous>, transform_indices = @transform_5, window_bounds = array<i64: 400, 2>}, {pipeline_mode = #tpu.pipeline_mode<synchronous>, transform_indices = @transform_6, window_bounds = array<i64: 1, 2>}, {transform_indices = @transform_7, window_bounds = array<i64: 8, 2>}]} {
    %c0 = arith.constant 0 : index
    %c0_0 = arith.constant 0 : index
    %0 = vector.load %arg1[%c0, %c0_0] : memref<8x20xf32, #tpu.memory_space<vmem>>, vector<8x20xf32>
    %1 = arith.truncf %0 : vector<8x20xf32> to vector<8x20xbf16>
    %c0_1 = arith.constant 0 : index
    %c0_2 = arith.constant 0 : index
    %2 = vector.load %arg2[%c0_1, %c0_2] : memref<20x400xbf16, #tpu.memory_space<vmem>>, vector<20x400xbf16>
    %cst = arith.constant dense<0.000000e+00> : vector<8x400xf32>
    %3 = tpu.matmul %1, %2, %cst {dimension_numbers = #tpu.dot_dimension_numbers<[1], [0], [0], [1], [0, 0, 1, 1], [], []>} : vector<8x20xbf16>, vector<20x400xbf16>, vector<8x400xf32> -> vector<8x400xf32>
    %c0_3 = arith.constant 0 : index
    %c0_4 = arith.constant 0 : index
    %4 = vector.load %arg3[%c0_3, %c0_4] : memref<1x400xf32, #tpu.memory_space<vmem>>, vector<1x400xf32>
    %5 = vector.broadcast %4 : vector<1x400xf32> to vector<8x400xf32>
    %6 = arith.addf %3, %5 : vector<8x400xf32>
    %cst_5 = arith.constant 0.000000e+00 : f32
    %7 = vector.broadcast %cst_5 : f32 to vector<8x400xf32>
    %8 = arith.maximumf %6, %7 : vector<8x400xf32>
    %9 = arith.truncf %8 : vector<8x400xf32> to vector<8x400xbf16>
    %c0_6 = arith.constant 0 : index
    %c0_7 = arith.constant 0 : index
    %10 = vector.load %arg4[%c0_6, %c0_7] : memref<400x400xbf16, #tpu.memory_space<vmem>>, vector<400x400xbf16>
    %cst_8 = arith.constant dense<0.000000e+00> : vector<8x400xf32>
    %11 = tpu.matmul %9, %10, %cst_8 {dimension_numbers = #tpu.dot_dimension_numbers<[1], [0], [0], [1], [0, 0, 1, 1], [], []>} : vector<8x400xbf16>, vector<400x400xbf16>, vector<8x400xf32> -> vector<8x400xf32>
    %c0_9 = arith.constant 0 : index
    %c0_10 = arith.constant 0 : index
    %12 = vector.load %arg5[%c0_9, %c0_10] : memref<1x400xf32, #tpu.memory_space<vmem>>, vector<1x400xf32>
    %13 = vector.broadcast %12 : vector<1x400xf32> to vector<8x400xf32>
    %14 = arith.addf %11, %13 : vector<8x400xf32>
    %cst_11 = arith.constant 0.000000e+00 : f32
    %15 = vector.broadcast %cst_11 : f32 to vector<8x400xf32>
    %16 = arith.maximumf %14, %15 : vector<8x400xf32>
    %17 = arith.truncf %16 : vector<8x400xf32> to vector<8x400xbf16>
    %c0_12 = arith.constant 0 : index
    %c0_13 = arith.constant 0 : index
    %18 = vector.load %arg6[%c0_12, %c0_13] : memref<400x2xbf16, #tpu.memory_space<vmem>>, vector<400x2xbf16>
    %cst_14 = arith.constant dense<0.000000e+00> : vector<8x2xf32>
    %19 = tpu.matmul %17, %18, %cst_14 {dimension_numbers = #tpu.dot_dimension_numbers<[1], [0], [0], [1], [0, 0, 1, 1], [], []>} : vector<8x400xbf16>, vector<400x2xbf16>, vector<8x2xf32> -> vector<8x2xf32>
    %c0_15 = arith.constant 0 : index
    %c0_16 = arith.constant 0 : index
    %20 = vector.load %arg7[%c0_15, %c0_16] : memref<1x2xf32, #tpu.memory_space<vmem>>, vector<1x2xf32>
    %21 = vector.broadcast %20 : vector<1x2xf32> to vector<8x2xf32>
    %22 = arith.addf %19, %21 : vector<8x2xf32>
    %23 = vector.extract_strided_slice %22 {offsets = [0, 0], sizes = [8, 1], strides = [1, 1]} : vector<8x2xf32> to vector<8x1xf32>
    %24 = vector.extract_strided_slice %22 {offsets = [0, 1], sizes = [8, 1], strides = [1, 1]} : vector<8x2xf32> to vector<8x1xf32>
    %25 = arith.maximumf %23, %24 : vector<8x1xf32>
    %26 = arith.subf %23, %24 : vector<8x1xf32>
    %27 = math.absf %26 : vector<8x1xf32>
    %cst_17 = arith.constant 0.000000e+00 : f32
    %28 = vector.broadcast %cst_17 : f32 to vector<8x1xf32>
    %29 = arith.subf %28, %27 : vector<8x1xf32>
    %30 = math.exp %29 : vector<8x1xf32>
    %31 = math.log1p %30 : vector<8x1xf32>
    %32 = arith.addf %25, %31 : vector<8x1xf32>
    %33 = vector.broadcast %32 : vector<8x1xf32> to vector<8x2xf32>
    %34 = arith.subf %22, %33 : vector<8x2xf32>
    %c0_18 = arith.constant 0 : index
    %c0_19 = arith.constant 0 : index
    %35 = vector.load %arg8[%c0_18, %c0_19] : memref<8x2xf32, #tpu.memory_space<vmem>>, vector<8x2xf32>
    tpu.vector_store %arg8[%c0_18, %c0_19], %34 {strides = array<i32>} : memref<8x2xf32, #tpu.memory_space<vmem>>, vector<8x2xf32>,
    return
  }
  func.func @transform_0(%arg0: i32) -> (i32, i32) {
    %c0_i32 = arith.constant 0 : i32
    %c0_i32_0 = arith.constant 0 : i32
    return %arg0, %c0_i32 : i32, i32
  }
  func.func @transform_1(%arg0: i32) -> (i32, i32) {
    %c0_i32 = arith.constant 0 : i32
    %c0_i32_0 = arith.constant 0 : i32
    %c0_i32_1 = arith.constant 0 : i32
    return %c0_i32, %c0_i32_0 : i32, i32
  }
  func.func @transform_2(%arg0: i32) -> (i32, i32) {
    %c0_i32 = arith.constant 0 : i32
    %c0_i32_0 = arith.constant 0 : i32
    %c0_i32_1 = arith.constant 0 : i32
    return %c0_i32, %c0_i32_0 : i32, i32
  }
  func.func @transform_3(%arg0: i32) -> (i32, i32) {
    %c0_i32 = arith.constant 0 : i32
    %c0_i32_0 = arith.constant 0 : i32
    %c0_i32_1 = arith.constant 0 : i32
    return %c0_i32, %c0_i32_0 : i32, i32
  }
  func.func @transform_4(%arg0: i32) -> (i32, i32) {
    %c0_i32 = arith.constant 0 : i32
    %c0_i32_0 = arith.constant 0 : i32
    %c0_i32_1 = arith.constant 0 : i32
    return %c0_i32, %c0_i32_0 : i32, i32
  }
  func.func @transform_5(%arg0: i32) -> (i32, i32) {
    %c0_i32 = arith.constant 0 : i32
    %c0_i32_0 = arith.constant 0 : i32
    %c0_i32_1 = arith.constant 0 : i32
    return %c0_i32, %c0_i32_0 : i32, i32
  }
  func.func @transform_6(%arg0: i32) -> (i32, i32) {
    %c0_i32 = arith.constant 0 : i32
    %c0_i32_0 = arith.constant 0 : i32
    %c0_i32_1 = arith.constant 0 : i32
    return %c0_i32, %c0_i32_0 : i32, i32
  }
  func.func @transform_7(%arg0: i32) -> (i32, i32) {
    %c0_i32 = arith.constant 0 : i32
    %c0_i32_0 = arith.constant 0 : i32
    return %arg0, %c0_i32 : i32, i32
  }
}

</mosaic_0001>

<bundles_post_ra>
// kernel: tpu_custom_call.1
= control target key start
LH: loop header
LB: loop body
LE: loop exit
PB: predicated region body
PF: predicated region fallthrough
CT: control target
= control target key end

     0   :  { %12 = vsyncpa [#allocation3], 0  ;;  %s1723_s24 = smov [#allocation2]   ;;  %s1938_s0 = inlined_call_operand.vmem [shape: f32[8,20], index: 0, kind: input, shape index: {}]   ;;  %s1939_s1 = inlined_call_operand.vmem [shape: bf16[20,400], index: 1, kind: input, shape index: {}]   ;;  %s1940_s2 = inlined_call_operand.vmem [shape: f32[1,400], index: 2, kind: input, shape index: {}]   ;;  %s1941_s3 = inlined_call_operand.hbm [shape: bf16[400,400], index: 3, kind: input, shape index: {}]   ;;  %s1942_s4 = inlined_call_operand.vmem [shape: f32[1,400], index: 4, kind: input, shape index: {}]   ;;  %s1943_s5 = inlined_call_operand.vmem [shape: bf16[400,2], index: 5, kind: input, shape index: {}]   ;;  %s1944_s6 = inlined_call_operand.vmem [shape: f32[1,2], index: 6, kind: input, shape index: {}]   ;;  %s1945_s7 = inlined_call_operand.vmem [shape: f32[8,2], index: 7, kind: output, shape index: {}]  }
   0x1   :  { %s24_s25 = sshll.u32 %s1723_s24, 4  ;;  %s1699_s28 = scalar_lea.hbm %s1941_s3, 12800  ;;  %s25_s25 = int_to_ptr.vmem [resolvable:$true] %s24_s25 }
   0x2   :  { %p1700_p0 = scmp.ne.s32.totalorder %s1941_s3, %s1699_s28  ;;  %p1703_p1 = scmp.lt.u32.totalorder %s1699_s28, %s1941_s3 }
   0x4   :  { %p1705_p2 = pnand %p1703_p1, %p1700_p0 }
   0x6   :  { %1708 = shalt.err (!%p1705_p2)
}
   0x7   :  { %s1709_s10 = scalar_lea.vmem %s25_s25, 12800  ;;  %p1714_p4 = scmp.lt.s32.totalorder %s25_s25, %s25_s25 }
   0x8   :  { %p1710_p3 = scmp.ne.s32.totalorder %s25_s25, %s1709_s10  ;;  %p1715_p5 = scmp.lt.s32.totalorder %s1709_s10, %s1709_s10 }
   0xa   :  { %p1716_p6 = por %p1715_p5, %p1714_p4 }
   0xc   :  { %p1717_p7 = pnand %p1716_p6, %p1710_p3 }
   0xe   :  { %1720 = shalt.err (!%p1717_p7)
}
   0xf   :  { %s1724_s11 = smov 256   ;;  %s1725_s12 = smov 16  }
  0x10   :  { %30 = dma.hbm_to_vmem [thread:$0]  %s1941_s3, 12800, %s25_s25, [#allocation3], %s1724_s11, %s1724_s11, %s1725_s12  }
  0x11   :  { %1721 = dma.done.wait [#allocation3], 12800  }
  0x12   :  { %1722 = vsyncadd [#allocation3], 4294954496  ;;  %v1726_v0 = vmov 0   ;;  %v1510_v1 = vld [vmem:[%s1939_s1 + $0x4] ss:$16 sps:$4 sm:$0xff]   ;;  %vm105_vm0 = vcmask 1041408  }
  0x13   :  { %150 = vmatprep.mubr.bf16.mxu0 %v1726_v0  ;;  %191 = vmatprep.mubr.bf16.mxu1 %v1726_v0  ;;  %v1512_v2 = vld [vmem:[%s1939_s1] ss:$16 sps:$4 sm:$0xff]   ;;  %v1515_v7 = vld [vmem:[%s1939_s1 + $0xc] ss:$16 sps:$4 sm:$0xff]   ;;  %v1517_v8 = vld [vmem:[%s1939_s1 + $0x8] ss:$16 sps:$4 sm:$0xff]  }
  0x14   :  { %1509 = vset.pattern.permute.xlu0 %v1726_v0  ;;  %v47_v3 = vld [vmem:[%s1939_s1 + $0x20] sm:$0x33]  ;;  %118 = vmatprep.subr.bf16.mxu0 %v1510_v1  ;;  %v48_v9 = vld [vmem:[%s1939_s1 + $0x28] sm:$0x33]  ;;  %vm101_vm1 = vcmask 162816   ;;  %vm830_vm2 = vcmask 130048  }
  0x15   :  { %v41_v4 = vld [vmem:[%s1938_s0] sm:$0xff]  ;;  %v1334_v5 = vcombine.high %v47_v3, %v47_v3  ;;  %v1333_v6 = vcombine.low %v47_v3, %v47_v3  ;;  %119 = vmatpush1.bf16.msra.mxu0 %v1512_v2  ;;  %159 = vmatprep.subr.bf16.mxu1 %v1515_v7  ;;  %v1336_v11 = vcombine.high %v48_v9, %v48_v9  ;;  %v1525_v16 = vld [vmem:[#allocation2 + $0xc] ss:$16 sps:$4 sm:$0xff]   ;;  %v1523_v19 = vld [vmem:[#allocation2 + $0x8] ss:$16 sps:$4 sm:$0xff]   ;;  %s1727_s0 = smov 127  }
  0x16   :  { %v1335_v12 = vcombine.low %v48_v9, %v48_v9  ;;  %v1522_v13 = vld [vmem:[#allocation2 + $0x4] ss:$16 sps:$4 sm:$0xff]   ;;  %160 = vmatpush1.bf16.msra.mxu1 %v1517_v8  ;;  %v42_v14 = vpack.c.bf16 %v41_v4, %v41_v4  ;;  %v1520_v17 = vld [vmem:[#allocation2] ss:$16 sps:$4 sm:$0xff]   ;;  %v1531_v20 = vld [vmem:[#allocation2 + $0x2c] ss:$16 sps:$4 sm:$0xff]  }
  0x17   :  { %1337 = vmatprep.subr.msk.bf16.mxu0 %vm105_vm0, %v1334_v5  ;;  %v107_v10 = vsel %vm105_vm0, %v1333_v6, 0  ;;  %1339 = vmatprep.subr.msk.bf16.mxu1 %vm105_vm0, %v1336_v11  ;;  %v1528_v18 = vld [vmem:[#allocation2 + $0x24] ss:$16 sps:$4 sm:$0xff]   ;;  %v1526_v21 = vld [vmem:[#allocation2 + $0x20] ss:$16 sps:$4 sm:$0xff]   ;;  %vm1322_vm4 = vcmask 15360  }
  0x18   :  { %v113_v15 = vsel %vm105_vm0, %v1335_v12, 0  ;;  %v1534_v22 = vld [vmem:[#allocation2 + $0x44] ss:$16 sps:$4 sm:$0xff]   ;;  %v1529_v23 = vld [vmem:[#allocation2 + $0x28] ss:$16 sps:$4 sm:$0xff]  }
  0x19   :  { %121 = vmatpush1.bf16.msra.mxu0 %v107_v10  ;;  %v1537_v24 = vld [vmem:[#allocation2 + $0x4c] ss:$16 sps:$4 sm:$0xff]   ;;  %v1532_v25 = vld [vmem:[#allocation2 + $0x40] ss:$16 sps:$4 sm:$0xff]   ;;  %v1540_v26 = vld [vmem:[#allocation2 + $0x64] ss:$16 sps:$4 sm:$0xff]  }
  0x1a   :  { %834 = vmatprep.subr.bf16.mxu0 %v1522_v13  ;;  %162 = vmatpush1.bf16.msra.mxu1 %v113_v15  ;;  %v1535_v27 = vld [vmem:[#allocation2 + $0x48] ss:$16 sps:$4 sm:$0xff]   ;;  %v1543_v28 = vld [vmem:[#allocation2 + $0x6c] ss:$16 sps:$4 sm:$0xff]   ;;  %v1538_v29 = vld [vmem:[#allocation2 + $0x60] ss:$16 sps:$4 sm:$0xff]  }
  0x1b   :  { %916 = vmatprep.subr.bf16.mxu1 %v1525_v16  ;;  %v1546_v30 = vld [vmem:[#allocation2 + $0x84] ss:$16 sps:$4 sm:$0xff]   ;;  %v1541_v31 = vld [vmem:[#allocation2 + $0x68] ss:$16 sps:$4 sm:$0xff]   ;;  %v1549_v32 = vld [vmem:[#allocation2 + $0x8c] ss:$16 sps:$4 sm:$0xff]  }
  0x1c   :  { %1338 = vmatmul.mubr.msk.bf16.vlgmr.msra.gmra.mrb[0].mxu0 %vm101_vm1, %v42_v14  ;;  %v1544_v33 = vld [vmem:[#allocation2 + $0x80] ss:$16 sps:$4 sm:$0xff]   ;;  %v1552_v34 = vld [vmem:[#allocation2 + $0xa4] ss:$16 sps:$4 sm:$0xff]   ;;  %v1547_v35 = vld [vmem:[#allocation2 + $0x88] ss:$16 sps:$4 sm:$0xff]  }
  0x1d   :  { %835 = vmatpush1.bf16.msra.mxu0 %v1520_v17  ;;  %1340 = vmatmul.mubr.msk.bf16.vlgmr.msra.gmra.mrb[0].mxu1 %vm101_vm1, %v42_v14  ;;  %v1555_v36 = vld [vmem:[#allocation2 + $0xac] ss:$16 sps:$4 sm:$0xff]   ;;  %v1550_v37 = vld [vmem:[#allocation2 + $0xa0] ss:$16 sps:$4 sm:$0xff]   ;;  %v1558_v38 = vld [vmem:[#allocation2 + $0xc4] ss:$16 sps:$4 sm:$0xff]  }
  0x1e   :  { %836 = vmatprep.subr.bf16.mxu0 %v1528_v18  ;;  %917 = vmatpush1.bf16.msra.mxu1 %v1523_v19  ;;  %v1553_v39 = vld [vmem:[#allocation2 + $0xa8] ss:$16 sps:$4 sm:$0xff]   ;;  %v1561_v40 = vld [vmem:[#allocation2 + $0xcc] ss:$16 sps:$4 sm:$0xff]   ;;  %v1556_v41 = vld [vmem:[#allocation2 + $0xc0] ss:$16 sps:$4 sm:$0xff]   ;;  %v51_v18 = vlaneseq }
  0x1f   :  { %918 = vmatprep.subr.bf16.mxu1 %v1531_v20  ;;  %v1564_v42 = vld [vmem:[#allocation2 + $0xe4] ss:$16 sps:$4 sm:$0xff]   ;;  %v1559_v43 = vld [vmem:[#allocation2 + $0xc8] ss:$16 sps:$4 sm:$0xff]   ;;  %v1567_v44 = vld [vmem:[#allocation2 + $0xec] ss:$16 sps:$4 sm:$0xff]  }
  0x20   :  { %v1562_v45 = vld [vmem:[#allocation2 + $0xe0] ss:$16 sps:$4 sm:$0xff]   ;;  %v1570_v46 = vld [vmem:[#allocation2 + $0x104] ss:$16 sps:$4 sm:$0xff]   ;;  %v1565_v47 = vld [vmem:[#allocation2 + $0xe8] ss:$16 sps:$4 sm:$0xff]  }
  0x21   :  { %837 = vmatpush1.bf16.msra.mxu0 %v1526_v21  ;;  %v1573_v48 = vld [vmem:[#allocation2 + $0x10c] ss:$16 sps:$4 sm:$0xff]   ;;  %v1568_v49 = vld [vmem:[#allocation2 + $0x100] ss:$16 sps:$4 sm:$0xff]   ;;  %v1571_v50 = vld [vmem:[#allocation2 + $0x108] ss:$16 sps:$4 sm:$0xff]  }
  0x22   :  { %838 = vmatprep.subr.bf16.mxu0 %v1534_v22  ;;  %919 = vmatpush1.bf16.msra.mxu1 %v1529_v23  ;;  %v1576_v51 = vld [vmem:[#allocation2 + $0x124] ss:$16 sps:$4 sm:$0xff]   ;;  %v1574_v52 = vld [vmem:[#allocation2 + $0x120] ss:$16 sps:$4 sm:$0xff]   ;;  %v1579_v53 = vld [vmem:[#allocation2 + $0x12c] ss:$16 sps:$4 sm:$0xff]  }
  0x23   :  { %920 = vmatprep.subr.bf16.mxu1 %v1537_v24  ;;  %v1582_v54 = vld [vmem:[#allocation2 + $0x144] ss:$16 sps:$4 sm:$0xff]   ;;  %v1577_v55 = vld [vmem:[#allocation2 + $0x128] ss:$16 sps:$4 sm:$0xff]   ;;  %v1585_v56 = vld [vmem:[#allocation2 + $0x14c] ss:$16 sps:$4 sm:$0xff]  }
  0x24   :  { %v1580_v57 = vld [vmem:[#allocation2 + $0x140] ss:$16 sps:$4 sm:$0xff]   ;;  %v1588_v58 = vld [vmem:[#allocation2 + $0x164] ss:$16 sps:$4 sm:$0xff]   ;;  %v1583_v59 = vld [vmem:[#allocation2 + $0x148] ss:$16 sps:$4 sm:$0xff]  }
  0x25   :  { %839 = vmatpush1.bf16.msra.mxu0 %v1532_v25  ;;  %v1591_v60 = vld [vmem:[#allocation2 + $0x16c] ss:$16 sps:$4 sm:$0xff]   ;;  %v1586_v61 = vld [vmem:[#allocation2 + $0x160] ss:$16 sps:$4 sm:$0xff]   ;;  %v1594_v62 = vld [vmem:[#allocation2 + $0x184] ss:$16 sps:$4 sm:$0xff]  }
  0x26   :  { %840 = vmatprep.subr.bf16.mxu0 %v1540_v26  ;;  %921 = vmatpush1.bf16.msra.mxu1 %v1535_v27  ;;  %v1589_v63 = vld [vmem:[#allocation2 + $0x168] ss:$16 sps:$4 sm:$0xff]   ;;  %v1597_v1 = vld [vmem:[#allocation2 + $0x18c] ss:$16 sps:$4 sm:$0xff]   ;;  %v1592_v2 = vld [vmem:[#allocation2 + $0x180] ss:$16 sps:$4 sm:$0xff]  }
  0x27   :  { %922 = vmatprep.subr.bf16.mxu1 %v1543_v28  ;;  %v1600_v3 = vld [vmem:[#allocation2 + $0x1a4] ss:$16 sps:$4 sm:$0xff]   ;;  %v1595_v4 = vld [vmem:[#allocation2 + $0x188] ss:$16 sps:$4 sm:$0xff]   ;;  %v1603_v5 = vld [vmem:[#allocation2 + $0x1ac] ss:$16 sps:$4 sm:$0xff]  }
  0x28   :  { %v1598_v6 = vld [vmem:[#allocation2 + $0x1a0] ss:$16 sps:$4 sm:$0xff]   ;;  %v1601_v7 = vld [vmem:[#allocation2 + $0x1a8] ss:$16 sps:$4 sm:$0xff]   ;;  %v1606_v8 = vld [vmem:[#allocation2 + $0x1c4] ss:$16 sps:$4 sm:$0xff]  }
  0x29   :  { %841 = vmatpush1.bf16.msra.mxu0 %v1538_v29  ;;  %v1609_v9 = vld [vmem:[#allocation2 + $0x1cc] ss:$16 sps:$4 sm:$0xff]   ;;  %v1604_v10 = vld [vmem:[#allocation2 + $0x1c0] ss:$16 sps:$4 sm:$0xff]   ;;  %v1607_v11 = vld [vmem:[#allocation2 + $0x1c8] ss:$16 sps:$4 sm:$0xff]  }
  0x2a   :  { %842 = vmatprep.subr.bf16.mxu0 %v1546_v30  ;;  %923 = vmatpush1.bf16.msra.mxu1 %v1541_v31  ;;  %v1612_v12 = vld [vmem:[#allocation2 + $0x1e4] ss:$16 sps:$4 sm:$0xff]   ;;  %v1615_v13 = vld [vmem:[#allocation2 + $0x1ec] ss:$16 sps:$4 sm:$0xff]   ;;  %v1610_v14 = vld [vmem:[#allocation2 + $0x1e0] ss:$16 sps:$4 sm:$0xff]  }
  0x2b   :  { %924 = vmatprep.subr.bf16.mxu1 %v1549_v32  ;;  %v1613_v15 = vld [vmem:[#allocation2 + $0x1e8] ss:$16 sps:$4 sm:$0xff]   ;;  %v1618_v16 = vld [vmem:[#allocation2 + $0x204] ss:$16 sps:$4 sm:$0xff]   ;;  %v1621_v17 = vld [vmem:[#allocation2 + $0x20c] ss:$16 sps:$4 sm:$0xff]  }
  0x2c   :  { %v1808_v19 = vshrl.u32 %v51_v18, 7  ;;  %v1814_v21 = vld [vmem:[%s1940_s2] sm:$0xf] }
  0x2d   :  { %843 = vmatpush1.bf16.msra.mxu0 %v1544_v33 }
  0x2e   :  { %844 = vmatprep.subr.bf16.mxu0 %v1552_v34  ;;  %925 = vmatpush1.bf16.msra.mxu1 %v1547_v35  ;;  %v53_v20 = vsub.s32 0, %v1808_v19  ;;  %v57_v22 = vsub.s32 1, %v1808_v19  ;;  %v65_v23 = vsub.s32 3, %v1808_v19 }
  0x2f   :  { %926 = vmatprep.subr.bf16.mxu1 %v1555_v36 }
  0x30   :  { %v54_v24 = vrot.slane %v1814_v21, %v53_v20  ;;  %v58_v25 = vrot.slane %v1814_v21, %v57_v22  ;;  %v66_v27 = vrot.slane %v1814_v21, %v65_v23 }
  0x31   :  { %845 = vmatpush1.bf16.msra.mxu0 %v1550_v37 }
  0x32   :  { %846 = vmatprep.subr.bf16.mxu0 %v1558_v38  ;;  %927 = vmatpush1.bf16.msra.mxu1 %v1553_v39 }
  0x33   :  { %928 = vmatprep.subr.bf16.mxu1 %v1561_v40 }
  0x35   :  { %847 = vmatpush1.bf16.msra.mxu0 %v1556_v41  ;;  %v1616_v41 = vld [vmem:[#allocation2 + $0x200] ss:$16 sps:$4 sm:$0xff]  }
  0x36   :  { %848 = vmatprep.subr.bf16.mxu0 %v1564_v42  ;;  %929 = vmatpush1.bf16.msra.mxu1 %v1559_v43  ;;  %v1619_v42 = vld [vmem:[#allocation2 + $0x208] ss:$16 sps:$4 sm:$0xff]  }
  0x37   :  { %930 = vmatprep.subr.bf16.mxu1 %v1567_v44 }
  0x39   :  { %849 = vmatpush1.bf16.msra.mxu0 %v1562_v45  ;;  %v1624_v45 = vld [vmem:[#allocation2 + $0x224] ss:$16 sps:$4 sm:$0xff]  }
  0x3a   :  { %850 = vmatprep.subr.bf16.mxu0 %v1570_v46  ;;  %931 = vmatpush1.bf16.msra.mxu1 %v1565_v47  ;;  %v1627_v46 = vld [vmem:[#allocation2 + $0x22c] ss:$16 sps:$4 sm:$0xff]  }
  0x3b   :  { %932 = vmatprep.subr.bf16.mxu1 %v1573_v48  ;;  %v1622_v48 = vld [vmem:[#allocation2 + $0x220] ss:$16 sps:$4 sm:$0xff]  }
  0x3d   :  { %851 = vmatpush1.bf16.msra.mxu0 %v1568_v49  ;;  %v1625_v49 = vld [vmem:[#allocation2 + $0x228] ss:$16 sps:$4 sm:$0xff]  }
  0x3e   :  { %852 = vmatprep.subr.bf16.mxu0 %v1576_v51  ;;  %933 = vmatpush1.bf16.msra.mxu1 %v1571_v50  ;;  %v1630_v50 = vld [vmem:[#allocation2 + $0x244] ss:$16 sps:$4 sm:$0xff]   ;;  %v1633_v51 = vld [vmem:[#allocation2 + $0x24c] ss:$16 sps:$4 sm:$0xff]  }
  0x3f   :  { %934 = vmatprep.subr.bf16.mxu1 %v1579_v53  ;;  %v1631_v53 = vld [vmem:[#allocation2 + $0x248] ss:$16 sps:$4 sm:$0xff]  }
  0x41   :  { %853 = vmatpush1.bf16.msra.mxu0 %v1574_v52  ;;  %v1628_v52 = vld [vmem:[#allocation2 + $0x240] ss:$16 sps:$4 sm:$0xff]  }
  0x42   :  { %854 = vmatprep.subr.bf16.mxu0 %v1582_v54  ;;  %935 = vmatpush1.bf16.msra.mxu1 %v1577_v55  ;;  %v1636_v54 = vld [vmem:[#allocation2 + $0x264] ss:$16 sps:$4 sm:$0xff]   ;;  %v1639_v55 = vld [vmem:[#allocation2 + $0x26c] ss:$16 sps:$4 sm:$0xff]  }
  0x43   :  { %936 = vmatprep.subr.bf16.mxu1 %v1585_v56  ;;  %v1634_v56 = vld [vmem:[#allocation2 + $0x260] ss:$16 sps:$4 sm:$0xff]  }
  0x45   :  { %855 = vmatpush1.bf16.msra.mxu0 %v1580_v57  ;;  %v1637_v57 = vld [vmem:[#allocation2 + $0x268] ss:$16 sps:$4 sm:$0xff]  }
  0x46   :  { %856 = vmatprep.subr.bf16.mxu0 %v1588_v58  ;;  %937 = vmatpush1.bf16.msra.mxu1 %v1583_v59  ;;  %v1642_v58 = vld [vmem:[#allocation2 + $0x284] ss:$16 sps:$4 sm:$0xff]   ;;  %v1645_v59 = vld [vmem:[#allocation2 + $0x28c] ss:$16 sps:$4 sm:$0xff]  }
  0x47   :  { %938 = vmatprep.subr.bf16.mxu1 %v1591_v60  ;;  %v1640_v60 = vld [vmem:[#allocation2 + $0x280] ss:$16 sps:$4 sm:$0xff]  }
  0x49   :  { %857 = vmatpush1.bf16.msra.mxu0 %v1586_v61  ;;  %v1643_v61 = vld [vmem:[#allocation2 + $0x288] ss:$16 sps:$4 sm:$0xff]  }
  0x4a   :  { %858 = vmatprep.subr.bf16.mxu0 %v1594_v62  ;;  %939 = vmatpush1.bf16.msra.mxu1 %v1589_v63  ;;  %v1648_v62 = vld [vmem:[#allocation2 + $0x2a4] ss:$16 sps:$4 sm:$0xff]   ;;  %v1651_v63 = vld [vmem:[#allocation2 + $0x2ac] ss:$16 sps:$4 sm:$0xff]  }
  0x4b   :  { %940 = vmatprep.subr.bf16.mxu1 %v1597_v1  ;;  %v1646_v1 = vld [vmem:[#allocation2 + $0x2a0] ss:$16 sps:$4 sm:$0xff]  }
  0x4d   :  { %859 = vmatpush1.bf16.msra.mxu0 %v1592_v2  ;;  %v1649_v2 = vld [vmem:[#allocation2 + $0x2a8] ss:$16 sps:$4 sm:$0xff]  }
  0x4e   :  { %860 = vmatprep.subr.bf16.mxu0 %v1600_v3  ;;  %941 = vmatpush1.bf16.msra.mxu1 %v1595_v4  ;;  %v61_v3 = vsub.s32 2, %v1808_v19  ;;  %v1654_v4 = vld [vmem:[#allocation2 + $0x2c4] ss:$16 sps:$4 sm:$0xff]  }
  0x4f   :  { %942 = vmatprep.subr.bf16.mxu1 %v1603_v5  ;;  %v1657_v5 = vld [vmem:[#allocation2 + $0x2cc] ss:$16 sps:$4 sm:$0xff]  }
  0x51   :  { %861 = vmatpush1.bf16.msra.mxu0 %v1598_v6  ;;  %v1652_v6 = vld [vmem:[#allocation2 + $0x2c0] ss:$16 sps:$4 sm:$0xff]  }
  0x52   :  { %943 = vmatpush1.bf16.msra.mxu1 %v1601_v7  ;;  %862 = vmatprep.subr.bf16.mxu0 %v1606_v8  ;;  %v1655_v7 = vld [vmem:[#allocation2 + $0x2c8] ss:$16 sps:$4 sm:$0xff]   ;;  %v62_v8 = vrot.slane %v1814_v21, %v61_v3  ;;  %v1671_v21 = vld [vmem:[%s1943_s5 + $0x40] sm:$0xff]  }
  0x53   :  { %944 = vmatprep.subr.bf16.mxu1 %v1609_v9  ;;  %v1660_v9 = vld [vmem:[#allocation2 + $0x2e4] ss:$16 sps:$4 sm:$0xff]  }
  0x55   :  { %863 = vmatpush1.bf16.msra.mxu0 %v1604_v10  ;;  %v1663_v10 = vld [vmem:[#allocation2 + $0x2ec] ss:$16 sps:$4 sm:$0xff]  }
  0x56   :  { %945 = vmatpush1.bf16.msra.mxu1 %v1607_v11  ;;  %864 = vmatprep.subr.bf16.mxu0 %v1612_v12  ;;  %v1658_v11 = vld [vmem:[#allocation2 + $0x2e0] ss:$16 sps:$4 sm:$0xff]   ;;  %v1661_v12 = vld [vmem:[#allocation2 + $0x2e8] ss:$16 sps:$4 sm:$0xff]  }
  0x57   :  { %946 = vmatprep.subr.bf16.mxu1 %v1615_v13 }
  0x59   :  { %865 = vmatpush1.bf16.msra.mxu0 %v1610_v14  ;;  %v1666_v14 = vld [vmem:[#allocation2 + $0x304] ss:$16 sps:$4 sm:$0xff]  }
  0x5a   :  { %947 = vmatpush1.bf16.msra.mxu1 %v1613_v15  ;;  %875 = vmatprep.subr.bf16.mxu0 %v1618_v16  ;;  %v1669_v15 = vld [vmem:[#allocation2 + $0x30c] ss:$16 sps:$4 sm:$0xff]   ;;  %v1664_v16 = vld [vmem:[#allocation2 + $0x300] ss:$16 sps:$4 sm:$0xff]  }
  0x5b   :  { %957 = vmatprep.subr.bf16.mxu1 %v1621_v17  ;;  %v1667_v17 = vld [vmem:[#allocation2 + $0x308] ss:$16 sps:$4 sm:$0xff]  }
  0xef   :  { %v152_v26 = vpop.f32.mrb[0].mxu0 }
  0xf0   :  { %v153_v28 = vadd.f32 %v152_v26, %v54_v24  ;;  %v154_v29 = vpop.f32.mrb[1].mxu0  ;;  %v1827_v32 = vpop.f32.mrb[0].mxu1  ;;  %v1670_v24 = vld [vmem:[%s1943_s5 + $0x80] sm:$0xff]  }
  0xf1   :  { %v155_v30 = vadd.f32 %v154_v29, %v58_v25  ;;  %v156_v31 = vpop.f32.mrb[2].mxu0  ;;  %v195_v35 = vpop.f32.mrb[1].mxu1  ;;  %v194_v13 = vadd.f32 %v1827_v32, %v62_v8  ;;  %v1672_v25 = vld [vmem:[%s1943_s5] sm:$0xff]   ;;  %v1675_v29 = vld [vmem:[%s1943_s5 + $0x8] sm:$0xff]   ;;  %v1678_v32 = vld [vmem:[%s1943_s5 + $0x10] sm:$0xff]  }
  0xf2   :  { %v200_v33 = vmax.f32 %v153_v28, 0.0  ;;  %v157_v34 = vpop.f32.mrb[3].mxu0  ;;  %v196_v37 = vadd.f32 %v195_v35, %v66_v27  ;;  %v197_v38 = vpop.f32.mrb[2].mxu1  ;;  %v1674_v27 = vld [vmem:[%s1943_s5 + $0x48] sm:$0xff]   ;;  %v1676_v31 = vld [vmem:[%s1943_s5 + $0x90] sm:$0xff]   ;;  %v1681_v35 = vld [vmem:[%s1943_s5 + $0x18] sm:$0xff]  }
  0xf3   :  { %v201_v36 = vmax.f32 %v155_v30, 0.0  ;;  %v198_v39 = vpop.f32.mrb[3].mxu1  ;;  %v202_v18 = vmax.f32 %v194_v13, 0.0  ;;  %v1673_v28 = vld [vmem:[%s1943_s5 + $0x88] sm:$0xff]   ;;  %v1677_v30 = vld [vmem:[%s1943_s5 + $0x50] sm:$0xff]   ;;  %v1679_v34 = vld [vmem:[%s1943_s5 + $0x98] sm:$0xff]  }
  0xf4   :  { %v203_v43 = vmax.f32 %v196_v37, 0.0  ;;  %v204_v44 = vpack.c.bf16 %v200_v33, %v200_v33  ;;  %v1680_v33 = vld [vmem:[%s1943_s5 + $0x58] sm:$0xff]   ;;  %v1682_v37 = vld [vmem:[%s1943_s5 + $0xa0] sm:$0xff]   ;;  %v1686_v39 = vld [vmem:[%s1943_s5 + $0x68] sm:$0xff]  }
  0xf5   :  { %v205_v40 = vpack.c.bf16 %v201_v36, %v201_v36  ;;  %v206_v26 = vpack.c.bf16 %v202_v18, %v202_v18  ;;  %v1683_v36 = vld [vmem:[%s1943_s5 + $0x60] sm:$0xff]  }
  0xf6   :  { %v207_v47 = vpack.c.bf16 %v203_v43, %v203_v43  ;;  %v1684_v38 = vld [vmem:[%s1943_s5 + $0x20] sm:$0xff]   ;;  %v1689_v43 = vld [vmem:[%s1943_s5 + $0x70] sm:$0xff]  }
  0xf7   :  { %866 = vmatprep.mubr.bf16.mxu0 %v205_v40  ;;  %948 = vmatprep.mubr.bf16.mxu1 %v205_v40  ;;  %v1685_v40 = vld [vmem:[%s1943_s5 + $0xa8] sm:$0xff]   ;;  %v1443_v8 = vld [vmem:[%s1944_s6] ss:$0 sm:$0xff] }
  0xf8   :  { %867 = vmatmul.mubr.bf16.vlgmr.msra.gmra.mrb[4].mxu0 %v204_v44  ;;  %949 = vmatmul.mubr.bf16.vlgmr.msra.gmra.mrb[4].mxu1 %v204_v44  ;;  %v1690_v44 = vld [vmem:[%s1943_s5 + $0x30] sm:$0xff]  }
  0xf9   :  { %876 = vmatpush1.bf16.msra.mxu0 %v1616_v41  ;;  %958 = vmatpush1.bf16.msra.mxu1 %v1619_v42  ;;  %v1687_v41 = vld [vmem:[%s1943_s5 + $0x28] sm:$0xff]   ;;  %v1688_v42 = vld [vmem:[%s1943_s5 + $0xb0] sm:$0xff]  }
  0xfa   :  { %877 = vmatprep.subr.bf16.mxu0 %v1624_v45  ;;  %959 = vmatprep.subr.bf16.mxu1 %v1627_v46  ;;  %v1691_v45 = vld [vmem:[%s1943_s5 + $0xb8] sm:$0xff]  }
  0xfb   :  { %1441 = vmatprep.mubr.msk.bf16.mxu0 %vm830_vm2, %v207_v47  ;;  %1442 = vmatprep.mubr.msk.bf16.mxu1 %vm830_vm2, %v207_v47  ;;  %v1692_v46 = vld [vmem:[%s1943_s5 + $0x78] sm:$0xff]  }
  0xfc   :  { %v1693_v47 = vld [vmem:[%s1943_s5 + $0x38] sm:$0xff]  }
  0xfd   :  { %878 = vmatpush1.bf16.msra.mxu0 %v1622_v48  ;;  %960 = vmatpush1.bf16.msra.mxu1 %v1625_v49  ;;  %v1694_v48 = vld [vmem:[%s1943_s5 + $0xc0] sm:$0xff]  }
  0xfe   :  { %879 = vmatprep.subr.bf16.mxu0 %v1630_v50  ;;  %961 = vmatprep.subr.bf16.mxu1 %v1633_v51  ;;  %v308_v49 = vld [vmem:[%s1942_s4] sm:$0xf] }
  0xff   :  { %v313_v50 = vrot.slane %v308_v49, %v53_v20  ;;  %v317_v51 = vrot.slane %v308_v49, %v57_v22 }
 0x101   :  { %880 = vmatpush1.bf16.msra.mxu0 %v1628_v52  ;;  %962 = vmatpush1.bf16.msra.mxu1 %v1631_v53  ;;  %v325_v52 = vrot.slane %v308_v49, %v65_v23 }
 0x102   :  { %881 = vmatprep.subr.bf16.mxu0 %v1636_v54  ;;  %963 = vmatprep.subr.bf16.mxu1 %v1639_v55 }
 0x105   :  { %882 = vmatpush1.bf16.msra.mxu0 %v1634_v56  ;;  %964 = vmatpush1.bf16.msra.mxu1 %v1637_v57 }
 0x106   :  { %883 = vmatprep.subr.bf16.mxu0 %v1642_v58  ;;  %965 = vmatprep.subr.bf16.mxu1 %v1645_v59 }
 0x109   :  { %884 = vmatpush1.bf16.msra.mxu0 %v1640_v60  ;;  %966 = vmatpush1.bf16.msra.mxu1 %v1643_v61 }
 0x10a   :  { %885 = vmatprep.subr.bf16.mxu0 %v1648_v62  ;;  %967 = vmatprep.subr.bf16.mxu1 %v1651_v63 }
 0x10d   :  { %886 = vmatpush1.bf16.msra.mxu0 %v1646_v1  ;;  %968 = vmatpush1.bf16.msra.mxu1 %v1649_v2 }
 0x10e   :  { %887 = vmatprep.subr.bf16.mxu0 %v1654_v4  ;;  %969 = vmatprep.subr.bf16.mxu1 %v1657_v5 }
 0x111   :  { %888 = vmatpush1.bf16.msra.mxu0 %v1652_v6  ;;  %970 = vmatpush1.bf16.msra.mxu1 %v1655_v7 }
 0x112   :  { %889 = vmatprep.subr.bf16.mxu0 %v1660_v9  ;;  %971 = vmatprep.subr.bf16.mxu1 %v1663_v10 }
 0x115   :  { %890 = vmatpush1.bf16.msra.mxu0 %v1658_v11  ;;  %972 = vmatpush1.bf16.msra.mxu1 %v1661_v12 }
 0x116   :  { %891 = vmatprep.subr.bf16.mxu0 %v1666_v14  ;;  %973 = vmatprep.subr.bf16.mxu1 %v1669_v15 }
 0x119   :  { %892 = vmatpush1.bf16.msra.mxu0 %v1664_v16  ;;  %974 = vmatpush1.bf16.msra.mxu1 %v1667_v17 }
 0x11a   :  { %1256 = vmatprep.subr.bf16.mxu1 %v1726_v0  ;;  %1470 = vmatprep.subr.bf16.mxu0 %v1671_v21 }
 0x11c   :  { %908 = vmatmul.mubr.bf16.vlgmr.msra.gmra.mrb[4].mxu0 %v206_v26  ;;  %990 = vmatmul.mubr.bf16.vlgmr.msra.gmra.mrb[4].mxu1 %v206_v26 }
 0x11d   :  { %1257 = vmatpush1.bf16.msra.mxu1 %v1670_v24  ;;  %1471 = vmatpush3.bf16.msra.mxu0 %v1672_v25 }
 0x11e   :  { %1258 = vmatprep.subr.bf16.mxu1 %v1726_v0  ;;  %1472 = vmatprep.subr.bf16.mxu0 %v1674_v27 }
 0x121   :  { %1259 = vmatpush1.bf16.msra.mxu1 %v1673_v28  ;;  %1473 = vmatpush3.bf16.msra.mxu0 %v1675_v29 }
 0x122   :  { %1260 = vmatprep.subr.bf16.mxu1 %v1726_v0  ;;  %1474 = vmatprep.subr.bf16.mxu0 %v1677_v30 }
 0x125   :  { %1261 = vmatpush1.bf16.msra.mxu1 %v1676_v31  ;;  %1475 = vmatpush3.bf16.msra.mxu0 %v1678_v32 }
 0x126   :  { %1262 = vmatprep.subr.bf16.mxu1 %v1726_v0  ;;  %1476 = vmatprep.subr.bf16.mxu0 %v1680_v33 }
 0x129   :  { %1263 = vmatpush1.bf16.msra.mxu1 %v1679_v34  ;;  %1477 = vmatpush3.bf16.msra.mxu0 %v1681_v35 }
 0x12a   :  { %1264 = vmatprep.subr.bf16.mxu1 %v1726_v0  ;;  %1478 = vmatprep.subr.bf16.mxu0 %v1683_v36 }
 0x12d   :  { %1265 = vmatpush1.bf16.msra.mxu1 %v1682_v37  ;;  %1479 = vmatpush3.bf16.msra.mxu0 %v1684_v38 }
 0x12e   :  { %1266 = vmatprep.subr.bf16.mxu1 %v1726_v0  ;;  %1480 = vmatprep.subr.bf16.mxu0 %v1686_v39 }
 0x131   :  { %1267 = vmatpush1.bf16.msra.mxu1 %v1685_v40  ;;  %1481 = vmatpush3.bf16.msra.mxu0 %v1687_v41 }
 0x132   :  { %1268 = vmatprep.subr.bf16.mxu1 %v1726_v0  ;;  %1482 = vmatprep.subr.bf16.mxu0 %v1689_v43 }
 0x135   :  { %1269 = vmatpush1.bf16.msra.mxu1 %v1688_v42  ;;  %1483 = vmatpush3.bf16.msra.mxu0 %v1690_v44 }
 0x136   :  { %1270 = vmatprep.subr.bf16.mxu1 %v1726_v0  ;;  %1484 = vmatprep.subr.bf16.mxu0 %v1692_v46 }
 0x139   :  { %1271 = vmatpush1.bf16.msra.mxu1 %v1691_v45  ;;  %1485 = vmatpush3.bf16.msra.mxu0 %v1693_v47 }
 0x13a   :  { %1272 = vmatprep.subr.bf16.mxu1 %v1726_v0  ;;  %v321_v0 = vrot.slane %v308_v49, %v61_v3 }
 0x13d   :  { %1273 = vmatpush1.bf16.msra.mxu1 %v1694_v48 }
 0x1ef   :  { %v909_v53 = vpop.f32.mrb[4].mxu0  ;;  %v991_v54 = vpop.f32.mrb[4].mxu1 }
 0x1f0   :  { %v1492_v55 = vadd.f32 %v909_v53, %v313_v50  ;;  %v1494_v56 = vadd.f32 %v991_v54, %v321_v0  ;;  %v911_v57 = vpop.f32.mrb[5].mxu0  ;;  %v993_v58 = vpop.f32.mrb[5].mxu1 }
 0x1f1   :  { %v1493_v59 = vadd.f32 %v911_v57, %v317_v51  ;;  %v1495_v60 = vadd.f32 %v993_v58, %v325_v52  ;;  %v913_v61 = vpop.f32.mrb[6].mxu0  ;;  %v995_v62 = vpop.f32.mrb[6].mxu1 }
 0x1f2   :  { %v998_v20 = vmax.f32 %v1492_v55, 0.0  ;;  %v1000_v63 = vmax.f32 %v1494_v56, 0.0  ;;  %v914_v1 = vpop.f32.mrb[7].mxu0  ;;  %v996_v2 = vpop.f32.mrb[7].mxu1 }
 0x1f3   :  { %v999_v3 = vmax.f32 %v1493_v59, 0.0  ;;  %v1001_v4 = vmax.f32 %v1495_v60, 0.0 }
 0x1f4   :  { %v1002_v19 = vpack.c.bf16 %v998_v20, %v998_v20  ;;  %v1004_v23 = vpack.c.bf16 %v1000_v63, %v1000_v63 }
 0x1f5   :  { %v1003_v22 = vpack.c.bf16 %v999_v3, %v999_v3  ;;  %v1005_v5 = vpack.c.bf16 %v1001_v4, %v1001_v4 }
 0x1f7   :  { %1248 = vmatprep.mubr.bf16.mxu0 %v1003_v22  ;;  %1469 = vmatprep.mubr.msk.bf16.mxu1 %vm830_vm2, %v1005_v5 }
 0x1f8   :  { %1249 = vmatmul.mubr.bf16.vlgmr.msra.gmra.mrb[8].mxu0 %v1002_v19  ;;  %1289 = vmatmul.mubr.bf16.vlgmr.msra.gmra.mrb[8].mxu1 %v1004_v23 }
 0x2cb   :  { %v1486_v6 = vpop.f32.mrb[8].mxu0  ;;  %v1290_v7 = vpop.f32.mrb[8].mxu1 }
 0x2cc   :  { %v1487_v9 = vpop.f32.mrb[9].mxu0  ;;  %v1292_v10 = vpop.f32.mrb[9].mxu1 }
 0x2cd   :  { %v1488_v11 = vadd.f32 %v1487_v9, %v1486_v6  ;;  %v1489_v12 = vpop.f32.mrb[10].mxu0  ;;  %v1293_v13 = vpop.f32.mrb[10].mxu1 }
 0x2ce   :  { %v1490_v14 = vpop.f32.mrb[11].mxu0  ;;  %v1294_v15 = vpop.f32.mrb[11].mxu1 }
 0x2cf   :  { %v1251_v16 = vadd.f32 %v1488_v11, %v1443_v8 }
 0x2d1   :  { %v1291_v17 = vadd.f32 %v1290_v7, %v1251_v16 }
 0x2d3   :  { %1297 = vrot.lane.b32.xlu0 %v1291_v17, %s1727_s0 }
 0x345   :  { %v1298_v18 = vpop.permute.xlu0 %1297 }
 0x346   :  { %v1301_v21 = vsub.f32 %v1291_v17, %v1298_v18  ;;  %v1300_v35 = vmax.f32 %v1291_v17, %v1298_v18 }
 0x348   :  { %v1302_v24 = vand.u32 2147483647, %v1301_v21 }
 0x34a   :  { %v1303_v25 = vsub.f32 0.0, %v1302_v24 }
 0x34c   :  { %v1304_v26 = vmul.f32 1.442695, %v1303_v25 }
 0x34e   :  { %1695 = vpow2.f32 %v1304_v26 }
 0x358   :  { %v1696_v27 = vpop.eup %1695 }
 0x359   :  { %v1306_v28 = vadd.f32 1.0, %v1696_v27  ;;  %v1309_v29 = vmul.f32 -0.5, %v1696_v27  ;;  %v1312_v31 = vand.u32 2147483647, %v1696_v27 }
 0x35b   :  { %1697 = vlog2.f32 %v1306_v28  ;;  %v1310_v30 = vadd.f32 1.0, %v1309_v29  ;;  %vm1313_vm3 = vcmp.lt.f32.partialorder %v1312_v31, 0.0004427343 }
 0x35d   :  { %v1311_v34 = vmul.f32 %v1696_v27, %v1310_v30 }
 0x365   :  { %v1698_v32 = vpop.eup %1697 }
 0x366   :  { %v1308_v33 = vmul.f32 0.6931472, %v1698_v32 }
 0x368   :  { %v1314_v36 = vsel %vm1313_vm3, %v1311_v34, %v1308_v33 }
 0x369   :  { %v1315_v37 = vadd.f32 %v1314_v36, %v1300_v35 }
 0x36b   :  { %1318 = vperm.xlu0 %1509, %v1315_v37  }
 0x3ea   :  { %v1319_v38 = vpop.permute.xlu0 %1318 }
 0x3eb   :  { %v1321_v39 = vsub.f32 %v1291_v17, %v1319_v38 }
 0x3ed   :  { %1323 = vst.msk [vmem:[%s1945_s7] sm:$0xff] %vm1322_vm4, %v1321_v39 }
 0x3ee   :  { %1328 = vsyncpa [#allocation3], 1 }

</bundles_post_ra>
